<compile_context>
chip_gen: v7x
topology: tpu7x:2x2x1
jax: 0.10.0
libtpu: 0.0.40
codegen_flags: <defaults>
</compile_context>

<pallas_src>
import functools

import jax
import jax.numpy as jnp
import numpy as np
from jax.experimental import pallas as pl
from jax.experimental.pallas import tpu as pltpu


def _round_up(x, m):
    return ((x + m - 1) // m) * m


# --------------------------------------------------------------------------
# Kernel 1: serial tanh-RNN recurrence, T_BLK timesteps per grid step.
# --------------------------------------------------------------------------
def _rnn_block_kernel(x_ref, w_hh_ref, out_ref, h_ref, *, t_blk):
    """h_t = tanh(x_t + h_{t-1} @ W_hh) for t_blk consecutive timesteps.

    x_t already contains (one-hot_t @ W_ih + b_ih + b_hh) folded in by the
    wrapper, so the only serial work is the (B,H)x(H,H) matmul + tanh.
    """
    @pl.when(pl.program_id(0) == 0)
    def _():
        h_ref[...] = jnp.zeros_like(h_ref)

    x = x_ref[...]            # (B_pad, t_blk, H_pad) — one dense load
    w_hh = w_hh_ref[...]      # (H_pad, H_pad) — VMEM resident across steps
    h = h_ref[...]            # carried in vregs across the unrolled loop

    hs = []
    for i in range(t_blk):    # static unroll of the only serial loop
        h = jnp.tanh(x[:, i, :] +
                     jnp.dot(h, w_hh, preferred_element_type=jnp.float32))
        hs.append(h)

    out_ref[...] = jnp.stack(hs, axis=1)   # one dense lane-aligned store
    h_ref[...] = h                         # carry hidden to next grid step


# --------------------------------------------------------------------------
# Kernel 2: batched output projection over all (B*S) rows — fully parallel.
# --------------------------------------------------------------------------
def _proj_kernel(h_ref, w_out_ref, b_out_ref, logits_ref):
    logits_ref[...] = (
        jnp.dot(h_ref[...], w_out_ref[...], preferred_element_type=jnp.float32)
        + b_out_ref[...])


def causal_lm_forward(src, params, *, t_blk=8):
    """src: int32 [B, S] token ids.

    Returns {'logits': [B, S, V], 'misc_output': [1, B, H]}
    (misc_output == nn.RNN's final hidden state h_n).
    """
    w_ih, w_hh, b_h, w_out, b_out = (params["w_ih"], params["w_hh"],
                                     params["b_h"], params["w_out"],
                                     params["b_out"])
    B, S = src.shape
    V, H = w_ih.shape

    # Sublane/lane-friendly padded sizes.
    B_pad = _round_up(max(B, 8), 8)       # fill >= one sublane group
    H_pad = _round_up(H, 128)             # lane-dense hidden dim
    V_pad = _round_up(V, 128)             # lane-dense vocab dim
    t_blk = min(t_blk, _round_up(S, 1))
    S_pad = _round_up(S, t_blk)

    # Zero-padded weights: padded hidden units stay identically zero.
    w_ih_p = jnp.pad(w_ih, ((0, 0), (0, H_pad - H)))
    w_hh_p = jnp.pad(w_hh, ((0, H_pad - H), (0, H_pad - H)))
    b_h_p = jnp.pad(b_h, ((0, 0), (0, H_pad - H)))
    w_out_p = jnp.pad(w_out, ((0, H_pad - H), (0, V_pad - V)))
    b_out_p = jnp.pad(b_out, ((0, 0), (0, V_pad - V)))

    # one-hot @ W_ih is just a row gather; fold the bias in once (loop
    # invariant) so the serial kernel carries neither W_ih nor b_h.
    x_contrib = jnp.take(w_ih_p, src, axis=0) + b_h_p          # [B, S, H_pad]
    x_contrib = jnp.pad(
        x_contrib, ((0, B_pad - B), (0, S_pad - S), (0, 0)))    # [B_pad,S_pad,H_pad]

    # ---- recurrence (sequential grid over time blocks) -------------------
    rnn_out_p = pl.pallas_call(
        functools.partial(_rnn_block_kernel, t_blk=t_blk),
        out_shape=jax.ShapeDtypeStruct((B_pad, S_pad, H_pad), jnp.float32),
        grid_spec=pltpu.PrefetchScalarGridSpec(
            num_scalar_prefetch=0,
            grid=(S_pad // t_blk,),
            in_specs=[
                pl.BlockSpec((B_pad, t_blk, H_pad), lambda tb: (0, tb, 0)),
                pl.BlockSpec((H_pad, H_pad), lambda tb: (0, 0)),
            ],
            out_specs=pl.BlockSpec((B_pad, t_blk, H_pad), lambda tb: (0, tb, 0)),
            scratch_shapes=[pltpu.VMEM((B_pad, H_pad), jnp.float32)],
        ),
        compiler_params=pltpu.CompilerParams(
            dimension_semantics=("arbitrary",)),      # recurrence is serial
    )(x_contrib, w_hh_p)

    # ---- output projection (parallel batched matmul over all rows) -------
    M = B_pad * S_pad
    tm = next(t for t in (512, 256, 128, 64, 32, 16, 8) if M % t == 0)
    tn = 256 if V_pad % 256 == 0 else 128
    h_flat = rnn_out_p.reshape(M, H_pad)              # contiguous, free reshape

    logits_flat = pl.pallas_call(
        _proj_kernel,
        out_shape=jax.ShapeDtypeStruct((M, V_pad), jnp.float32),
        grid_spec=pltpu.PrefetchScalarGridSpec(
            num_scalar_prefetch=0,
            grid=(M // tm, V_pad // tn),
            in_specs=[
                pl.BlockSpec((tm, H_pad), lambda i, j: (i, 0)),
                pl.BlockSpec((H_pad, tn), lambda i, j: (0, j)),
                pl.BlockSpec((1, tn), lambda i, j: (0, j)),
            ],
            out_specs=pl.BlockSpec((tm, tn), lambda i, j: (i, j)),
        ),
        compiler_params=pltpu.CompilerParams(
            dimension_semantics=("parallel", "parallel")),
    )(h_flat, w_out_p, b_out_p)

    logits = logits_flat.reshape(B_pad, S_pad, V_pad)[:B, :S, :V]
    hidden = rnn_out_p[:B, S - 1, :H][None]            # [1, B, H] == h_n
    return {"logits": logits, "misc_output": hidden}


# --------------------------------------------------------------------------
# Pure-JAX reference (mirrors nn.RNN(tanh) + nn.Linear) for validation.
# --------------------------------------------------------------------------
def _reference_forward(src, params):
    w_ih, w_hh, b_h, w_out, b_out = (params["w_ih"], params["w_hh"],
                                     params["b_h"], params["w_out"],
                                     params["b_out"])
    B, S = src.shape
    H = w_hh.shape[0]
    x_contrib = jnp.take(w_ih, src, axis=0) + b_h      # == one_hot @ W_ih + b

    def step(h, x_t):
        h_new = jnp.tanh(x_t + h @ w_hh)
        return h_new, h_new

    h0 = jnp.zeros((B, H), jnp.float32)
    h_n, hs = jax.lax.scan(step, h0, jnp.transpose(x_contrib, (1, 0, 2)))
    rnn_out = jnp.transpose(hs, (1, 0, 2))              # [B, S, H]
    logits = rnn_out @ w_out + b_out
    return logits, h_n[None]                            # [B,S,V], [1,B,H]


def init_params(key, vocab_size, embed_dim):
    """Deterministic synthetic parameters (shapes match nn.RNN + nn.Linear)."""
    k1, k2, k3, k4, k5 = jax.random.split(key, 5)
    scale = 1.0 / np.sqrt(embed_dim)
    u = lambda k, shape: jax.random.uniform(k, shape, jnp.float32, -scale, scale)
    return {
        # nn.RNN(input=V, hidden=H): weight_ih [H,V], weight_hh [H,H] -> stored transposed
        "w_ih": u(k1, (vocab_size, embed_dim)),
        "w_hh": u(k2, (embed_dim, embed_dim)),
        "b_h": u(k3, (1, embed_dim)),            # b_ih + b_hh folded together
        # nn.Linear(embed_dim, vocab_size): weight [V,H] -> stored transposed [H,V]
        "w_out": u(k4, (embed_dim, vocab_size)),
        "b_out": u(k5, (1, vocab_size)),
    }


if __name__ == "__main__":
    VOCAB = 32     # vocab_size
    EMBED = 32     # embed_dim (RNN hidden size)
    BATCH = 2
    SEQ = 8

    key = jax.random.PRNGKey(0)
    k_params, k_src = jax.random.split(key)
    params = init_params(k_params, VOCAB, EMBED)
    src = jax.random.randint(k_src, (BATCH, SEQ), 0, VOCAB, dtype=jnp.int32)

    out = causal_lm_forward(src, params)
    logits = jax.block_until_ready(out["logits"])
    hidden = jax.block_until_ready(out["misc_output"])

    assert logits.shape == (BATCH, SEQ, VOCAB)
    assert hidden.shape == (1, BATCH, EMBED)

    ref_logits, ref_hidden = _reference_forward(src, params)
    np.testing.assert_allclose(np.asarray(logits), np.asarray(ref_logits),
                               rtol=1e-5, atol=1e-5)
    np.testing.assert_allclose(np.asarray(hidden), np.asarray(ref_hidden),
                               rtol=1e-5, atol=1e-5)

    print("KERNEL_OK")
</pallas_src>

<mosaic_0001>
module attributes {stable_mosaic.version = 11 : i64} {
  func.func @_rnn_block_kernel(%arg0: i32, %arg1: memref<8x8x128xf32, #tpu.memory_space<vmem>>, %arg2: memref<128x128xf32, #tpu.memory_space<vmem>>, %arg3: memref<8x8x128xf32, #tpu.memory_space<vmem>>, %arg4: memref<8x128xf32, #tpu.memory_space<vmem>>) attributes {dimension_semantics = [#tpu.dimension_semantics<arbitrary>], iteration_bounds = array<i64: 1>, scalar_prefetch = 0 : i64, scratch_operands = 1 : i64, tpu.core_type = #tpu.core_type<tc>, window_params = [{transform_indices = @transform_0, window_bounds = array<i64: 8, 8, 128>}, {pipeline_mode = #tpu.pipeline_mode<synchronous>, transform_indices = @transform_1, window_bounds = array<i64: 128, 128>}, {transform_indices = @transform_2, window_bounds = array<i64: 8, 8, 128>}]} {
    %c0_i32 = arith.constant 0 : i32
    %0 = arith.cmpi eq, %arg0, %c0_i32 : i32
    %1 = arith.extui %0 : i1 to i32
    %c0_i32_0 = arith.constant 0 : i32
    %2 = arith.cmpi ne, %1, %c0_i32_0 : i32
    scf.if %2 {
      %cst_19 = arith.constant 0.000000e+00 : f32
      %57 = vector.broadcast %cst_19 : f32 to vector<8x128xf32>
      %c0_20 = arith.constant 0 : index
      %c0_21 = arith.constant 0 : index
      %58 = vector.load %arg4[%c0_20, %c0_21] : memref<8x128xf32, #tpu.memory_space<vmem>>, vector<8x128xf32>
      tpu.vector_store %arg4[%c0_20, %c0_21], %57 {strides = array<i32>} : memref<8x128xf32, #tpu.memory_space<vmem>>, vector<8x128xf32>,
    } else {
    }
    %c0 = arith.constant 0 : index
    %c0_1 = arith.constant 0 : index
    %c0_2 = arith.constant 0 : index
    %3 = vector.load %arg1[%c0, %c0_1, %c0_2] : memref<8x8x128xf32, #tpu.memory_space<vmem>>, vector<8x8x128xf32>
    %c0_3 = arith.constant 0 : index
    %c0_4 = arith.constant 0 : index
    %4 = vector.load %arg2[%c0_3, %c0_4] : memref<128x128xf32, #tpu.memory_space<vmem>>, vector<128x128xf32>
    %c0_5 = arith.constant 0 : index
    %c0_6 = arith.constant 0 : index
    %5 = vector.load %arg4[%c0_5, %c0_6] : memref<8x128xf32, #tpu.memory_space<vmem>>, vector<8x128xf32>
    %6 = vector.extract_strided_slice %3 {offsets = [0, 0, 0], sizes = [8, 1, 128], strides = [1, 1, 1]} : vector<8x8x128xf32> to vector<8x1x128xf32>
    %7 = vector.shape_cast %6 : vector<8x1x128xf32> to vector<8x128xf32>
    %cst = arith.constant dense<0.000000e+00> : vector<8x128xf32>
    %8 = tpu.matmul %5, %4, %cst {dimension_numbers = #tpu.dot_dimension_numbers<[1], [0], [0], [1], [0, 0, 1, 1], [], []>} : vector<8x128xf32>, vector<128x128xf32>, vector<8x128xf32> -> vector<8x128xf32>
    %9 = arith.addf %7, %8 : vector<8x128xf32>
    %10 = math.tanh %9 : vector<8x128xf32>
    %11 = vector.extract_strided_slice %3 {offsets = [0, 1, 0], sizes = [8, 1, 128], strides = [1, 1, 1]} : vector<8x8x128xf32> to vector<8x1x128xf32>
    %12 = vector.shape_cast %11 : vector<8x1x128xf32> to vector<8x128xf32>
    %cst_7 = arith.constant dense<0.000000e+00> : vector<8x128xf32>
    %13 = tpu.matmul %10, %4, %cst_7 {dimension_numbers = #tpu.dot_dimension_numbers<[1], [0], [0], [1], [0, 0, 1, 1], [], []>} : vector<8x128xf32>, vector<128x128xf32>, vector<8x128xf32> -> vector<8x128xf32>
    %14 = arith.addf %12, %13 : vector<8x128xf32>
    %15 = math.tanh %14 : vector<8x128xf32>
    %16 = vector.extract_strided_slice %3 {offsets = [0, 2, 0], sizes = [8, 1, 128], strides = [1, 1, 1]} : vector<8x8x128xf32> to vector<8x1x128xf32>
    %17 = vector.shape_cast %16 : vector<8x1x128xf32> to vector<8x128xf32>
    %cst_8 = arith.constant dense<0.000000e+00> : vector<8x128xf32>
    %18 = tpu.matmul %15, %4, %cst_8 {dimension_numbers = #tpu.dot_dimension_numbers<[1], [0], [0], [1], [0, 0, 1, 1], [], []>} : vector<8x128xf32>, vector<128x128xf32>, vector<8x128xf32> -> vector<8x128xf32>
    %19 = arith.addf %17, %18 : vector<8x128xf32>
    %20 = math.tanh %19 : vector<8x128xf32>
    %21 = vector.extract_strided_slice %3 {offsets = [0, 3, 0], sizes = [8, 1, 128], strides = [1, 1, 1]} : vector<8x8x128xf32> to vector<8x1x128xf32>
    %22 = vector.shape_cast %21 : vector<8x1x128xf32> to vector<8x128xf32>
    %cst_9 = arith.constant dense<0.000000e+00> : vector<8x128xf32>
    %23 = tpu.matmul %20, %4, %cst_9 {dimension_numbers = #tpu.dot_dimension_numbers<[1], [0], [0], [1], [0, 0, 1, 1], [], []>} : vector<8x128xf32>, vector<128x128xf32>, vector<8x128xf32> -> vector<8x128xf32>
    %24 = arith.addf %22, %23 : vector<8x128xf32>
    %25 = math.tanh %24 : vector<8x128xf32>
    %26 = vector.extract_strided_slice %3 {offsets = [0, 4, 0], sizes = [8, 1, 128], strides = [1, 1, 1]} : vector<8x8x128xf32> to vector<8x1x128xf32>
    %27 = vector.shape_cast %26 : vector<8x1x128xf32> to vector<8x128xf32>
    %cst_10 = arith.constant dense<0.000000e+00> : vector<8x128xf32>
    %28 = tpu.matmul %25, %4, %cst_10 {dimension_numbers = #tpu.dot_dimension_numbers<[1], [0], [0], [1], [0, 0, 1, 1], [], []>} : vector<8x128xf32>, vector<128x128xf32>, vector<8x128xf32> -> vector<8x128xf32>
    %29 = arith.addf %27, %28 : vector<8x128xf32>
    %30 = math.tanh %29 : vector<8x128xf32>
    %31 = vector.extract_strided_slice %3 {offsets = [0, 5, 0], sizes = [8, 1, 128], strides = [1, 1, 1]} : vector<8x8x128xf32> to vector<8x1x128xf32>
    %32 = vector.shape_cast %31 : vector<8x1x128xf32> to vector<8x128xf32>
    %cst_11 = arith.constant dense<0.000000e+00> : vector<8x128xf32>
    %33 = tpu.matmul %30, %4, %cst_11 {dimension_numbers = #tpu.dot_dimension_numbers<[1], [0], [0], [1], [0, 0, 1, 1], [], []>} : vector<8x128xf32>, vector<128x128xf32>, vector<8x128xf32> -> vector<8x128xf32>
    %34 = arith.addf %32, %33 : vector<8x128xf32>
    %35 = math.tanh %34 : vector<8x128xf32>
    %36 = vector.extract_strided_slice %3 {offsets = [0, 6, 0], sizes = [8, 1, 128], strides = [1, 1, 1]} : vector<8x8x128xf32> to vector<8x1x128xf32>
    %37 = vector.shape_cast %36 : vector<8x1x128xf32> to vector<8x128xf32>
    %cst_12 = arith.constant dense<0.000000e+00> : vector<8x128xf32>
    %38 = tpu.matmul %35, %4, %cst_12 {dimension_numbers = #tpu.dot_dimension_numbers<[1], [0], [0], [1], [0, 0, 1, 1], [], []>} : vector<8x128xf32>, vector<128x128xf32>, vector<8x128xf32> -> vector<8x128xf32>
    %39 = arith.addf %37, %38 : vector<8x128xf32>
    %40 = math.tanh %39 : vector<8x128xf32>
    %41 = vector.extract_strided_slice %3 {offsets = [0, 7, 0], sizes = [8, 1, 128], strides = [1, 1, 1]} : vector<8x8x128xf32> to vector<8x1x128xf32>
    %42 = vector.shape_cast %41 : vector<8x1x128xf32> to vector<8x128xf32>
    %cst_13 = arith.constant dense<0.000000e+00> : vector<8x128xf32>
    %43 = tpu.matmul %40, %4, %cst_13 {dimension_numbers = #tpu.dot_dimension_numbers<[1], [0], [0], [1], [0, 0, 1, 1], [], []>} : vector<8x128xf32>, vector<128x128xf32>, vector<8x128xf32> -> vector<8x128xf32>
    %44 = arith.addf %42, %43 : vector<8x128xf32>
    %45 = math.tanh %44 : vector<8x128xf32>
    %46 = vector.shape_cast %10 : vector<8x128xf32> to vector<8x1x128xf32>
    %47 = vector.shape_cast %15 : vector<8x128xf32> to vector<8x1x128xf32>
    %48 = vector.shape_cast %20 : vector<8x128xf32> to vector<8x1x128xf32>
    %49 = vector.shape_cast %25 : vector<8x128xf32> to vector<8x1x128xf32>
    %50 = vector.shape_cast %30 : vector<8x128xf32> to vector<8x1x128xf32>
    %51 = vector.shape_cast %35 : vector<8x128xf32> to vector<8x1x128xf32>
    %52 = vector.shape_cast %40 : vector<8x128xf32> to vector<8x1x128xf32>
    %53 = vector.shape_cast %45 : vector<8x128xf32> to vector<8x1x128xf32>
    %54 = tpu.concatenate %46, %47, %48, %49, %50, %51, %52, %53 in 1 : vector<8x1x128xf32>, vector<8x1x128xf32>, vector<8x1x128xf32>, vector<8x1x128xf32>, vector<8x1x128xf32>, vector<8x1x128xf32>, vector<8x1x128xf32>, vector<8x1x128xf32> -> vector<8x8x128xf32>
    %c0_14 = arith.constant 0 : index
    %c0_15 = arith.constant 0 : index
    %c0_16 = arith.constant 0 : index
    %55 = vector.load %arg3[%c0_14, %c0_15, %c0_16] : memref<8x8x128xf32, #tpu.memory_space<vmem>>, vector<8x8x128xf32>
    tpu.vector_store %arg3[%c0_14, %c0_15, %c0_16], %54 {strides = array<i32>} : memref<8x8x128xf32, #tpu.memory_space<vmem>>, vector<8x8x128xf32>,
    %c0_17 = arith.constant 0 : index
    %c0_18 = arith.constant 0 : index
    %56 = vector.load %arg4[%c0_17, %c0_18] : memref<8x128xf32, #tpu.memory_space<vmem>>, vector<8x128xf32>
    tpu.vector_store %arg4[%c0_17, %c0_18], %45 {strides = array<i32>} : memref<8x128xf32, #tpu.memory_space<vmem>>, vector<8x128xf32>,
    return
  }
  func.func @transform_0(%arg0: i32) -> (i32, i32, i32) {
    %c0_i32 = arith.constant 0 : i32
    %c0_i32_0 = arith.constant 0 : i32
    %c0_i32_1 = arith.constant 0 : i32
    return %c0_i32, %arg0, %c0_i32_0 : i32, i32, i32
  }
  func.func @transform_1(%arg0: i32) -> (i32, i32) {
    %c0_i32 = arith.constant 0 : i32
    %c0_i32_0 = arith.constant 0 : i32
    %c0_i32_1 = arith.constant 0 : i32
    return %c0_i32, %c0_i32_0 : i32, i32
  }
  func.func @transform_2(%arg0: i32) -> (i32, i32, i32) {
    %c0_i32 = arith.constant 0 : i32
    %c0_i32_0 = arith.constant 0 : i32
    %c0_i32_1 = arith.constant 0 : i32
    return %c0_i32, %arg0, %c0_i32_0 : i32, i32, i32
  }
}

</mosaic_0001>

<bundles_post_ra>
// kernel: tpu_custom_call.1
= control target key start
LH: loop header
LB: loop body
LE: loop exit
PB: predicated region body
PF: predicated region fallthrough
CT: control target
= control target key end

     0   :  { %7 = vsyncpa [#allocation4], 0  ;;  %s2534_s0 = inlined_call_operand.hbm [shape: f32[8,8,128], index: 0, kind: input, shape index: {}]   ;;  %s2535_s1 = inlined_call_operand.hbm [shape: f32[128,128], index: 1, kind: input, shape index: {}]   ;;  %s2536_s2 = inlined_call_operand.hbm [shape: f32[8,8,128], index: 2, kind: output, shape index: {}]  }
   0x1   :  { %8 = vsyncpa [#allocation7], 0 }
   0x2   :  { %9 = vsyncpa [#allocation5], 0  ;;  %s1984_s9 = smov [#allocation3]   ;;  %s1912_s13 = scalar_lea.hbm %s2534_s0, 1024 }
   0x3   :  { %s15_s10 = sshll.u32 %s1984_s9, 4  ;;  %p1913_p0 = scmp.ne.s32.totalorder %s2534_s0, %s1912_s13  ;;  %s16_s10 = int_to_ptr.vmem [resolvable:$true] %s15_s10 }
   0x4   :  { %p1916_p1 = scmp.lt.u32.totalorder %s1912_s13, %s2534_s0 }
   0x6   :  { %p1918_p2 = pnand %p1916_p1, %p1913_p0 }
   0x8   :  { %1921 = shalt.err (!%p1918_p2)
}
   0x9   :  { %s1922_s18 = scalar_lea.vmem %s16_s10, 1024  ;;  %p1927_p4 = scmp.lt.s32.totalorder %s16_s10, %s16_s10 }
   0xa   :  { %p1923_p3 = scmp.ne.s32.totalorder %s16_s10, %s1922_s18  ;;  %p1928_p5 = scmp.lt.s32.totalorder %s1922_s18, %s1922_s18 }
   0xc   :  { %p1929_p6 = por %p1928_p5, %p1927_p4 }
   0xe   :  { %p1930_p7 = pnand %p1929_p6, %p1923_p3 }
  0x10   :  { %1933 = shalt.err (!%p1930_p7)
}
  0x11   :  { %s1985_s19 = smov 128   ;;  %s1986_s20 = smov 8  }
  0x12   :  { %21 = dma.hbm_to_vmem [thread:$0]  %s2534_s0, 1024, %s16_s10, [#allocation4], %s1985_s19, %s1985_s19, %s1986_s20  }
  0x13   :  { %s1987_s23 = smov [#allocation6]   ;;  %s1934_s27 = scalar_lea.hbm %s2535_s1, 2048 }
  0x14   :  { %s27_s24 = sshll.u32 %s1987_s23, 4  ;;  %p1935_p8 = scmp.ne.s32.totalorder %s2535_s1, %s1934_s27  ;;  %s28_s24 = int_to_ptr.vmem [resolvable:$true] %s27_s24 }
  0x15   :  { %p1938_p9 = scmp.lt.u32.totalorder %s1934_s27, %s2535_s1 }
  0x17   :  { %p1940_p10 = pnand %p1938_p9, %p1935_p8 }
  0x19   :  { %1943 = shalt.err (!%p1940_p10)
}
  0x1a   :  { %s1944_s4 = scalar_lea.vmem %s28_s24, 2048  ;;  %p1949_p12 = scmp.lt.s32.totalorder %s28_s24, %s28_s24 }
  0x1b   :  { %p1945_p11 = scmp.ne.s32.totalorder %s28_s24, %s1944_s4  ;;  %p1950_p13 = scmp.lt.s32.totalorder %s1944_s4, %s1944_s4 }
  0x1d   :  { %p1951_p0 = por %p1950_p13, %p1949_p12 }
  0x1f   :  { %p1952_p1 = pnand %p1951_p0, %p1945_p11 }
  0x21   :  { %1955 = shalt.err (!%p1952_p1)
}
  0x22   :  { %33 = dma.hbm_to_vmem [thread:$0]  %s2535_s1, 2048, %s28_s24, [#allocation7], %s1985_s19, %s1985_s19, %s1986_s20  }
  0x23   :  { %1978 = dma.done.wait [#allocation4], 1024  }
  0x24   :  { %1979 = vsyncadd [#allocation4], 4294966272 }
  0x25   :  { %1980 = dma.done.wait [#allocation7], 2048  }
  0x26   :  { %1981 = vsyncadd [#allocation7], 4294965248  ;;  %v1988_v0 = vmov 0.0|0.0   ;;  %vm1989_vm0 = vmmov 0   ;;  %v1990_v1 = vmov 0.0   ;;  %v53_v2 = vld [vmem:[#allocation6] sm:$0xff] }
  0x27   :  { %1584 = vmatprep.subr.bf16.mxu0 %v1988_v0  ;;  %1336 = vmatprep.mubr.msk.f32.mxu0 %vm1989_vm0, %v1990_v1  ;;  %v54_v3 = vld [vmem:[#allocation6 + $0x8] sm:$0xff]  ;;  %v55_v4 = vld [vmem:[#allocation6 + $0x10] sm:$0xff]  ;;  %v56_v6 = vld [vmem:[#allocation6 + $0x18] sm:$0xff]  ;;  %vm181_vm1 = vcmask 1041409   ;;  %vm184_vm2 = vcmask 1042434   ;;  %vm187_vm3 = vcmask 1043459  }
  0x28   :  { %1608 = vmatprep.subr.bf16.mxu1 %v1988_v0  ;;  %1371 = vmatprep.mubr.msk.f32.mxu1 %vm1989_vm0, %v1990_v1  ;;  %v2043_v5 = vpack.c.bf16 %v54_v3, %v53_v2  ;;  %v2046_v7 = vpack.c.bf16 %v56_v6, %v55_v4  ;;  %v57_v8 = vld [vmem:[#allocation6 + $0x20] sm:$0xff]  ;;  %v58_v9 = vld [vmem:[#allocation6 + $0x28] sm:$0xff]  ;;  %v59_v11 = vld [vmem:[#allocation6 + $0x30] sm:$0xff]  ;;  %vm190_vm4 = vcmask 1044484   ;;  %vm193_vm5 = vcmask 1045509   ;;  %s1991_s1 = smov [#allocation8]  }
  0x29   :  { %v2052_v10 = vpack.c.bf16 %v58_v9, %v57_v8  ;;  %v60_v12 = vld [vmem:[#allocation6 + $0x38] sm:$0xff]  ;;  %v61_v14 = vld [vmem:[#allocation6 + $0x40] sm:$0xff]  ;;  %v62_v15 = vld [vmem:[#allocation6 + $0x48] sm:$0xff]  ;;  %vm196_vm6 = vcmask 1046534   ;;  %vm199_vm7 = vcmask 1047559   ;;  %vm1063_vm8 = vcmask 1041408  }
  0x2a   :  { %1586 = vmatpush3.bf16.msra.mxu0 %v2043_v5  ;;  %1610 = vmatpush3.bf16.msra.mxu1 %v2043_v5  ;;  %v2058_v13 = vpack.c.bf16 %v60_v12, %v59_v11  ;;  %v2064_v16 = vpack.c.bf16 %v62_v15, %v61_v14  ;;  %v63_v17 = vld [vmem:[#allocation6 + $0x50] sm:$0xff]  ;;  %v64_v18 = vld [vmem:[#allocation6 + $0x58] sm:$0xff]  ;;  %v65_v20 = vld [vmem:[#allocation6 + $0x60] sm:$0xff]  ;;  %vm1054_vm9 = vcmask 1040384   ;;  %vm1072_vm10 = vcmask 1042432   ;;  %s1155_s6 = sshll.u32 %s1991_s1, 4  ;;  %s1156_s6 = int_to_ptr.vmem [resolvable:$true] %s1155_s6 }
  0x2b   :  { %1587 = vmatprep.subr.bf16.mxu0 %v1988_v0  ;;  %1611 = vmatprep.subr.bf16.mxu1 %v1988_v0  ;;  %v2070_v19 = vpack.c.bf16 %v64_v18, %v63_v17  ;;  %v66_v21 = vld [vmem:[#allocation6 + $0x68] sm:$0xff]  ;;  %v67_v23 = vld [vmem:[#allocation6 + $0x70] sm:$0xff]  ;;  %v68_v24 = vld [vmem:[#allocation6 + $0x78] sm:$0xff]  ;;  %vm1081_vm11 = vcmask 1043456   ;;  %vm1090_vm12 = vcmask 1044480   ;;  %vm1099_vm13 = vcmask 1045504   ;;  %p1961_p3 = scmp.lt.s32.totalorder %s1156_s6, %s1156_s6 }
  0x2c   :  { %v2076_v22 = vpack.c.bf16 %v66_v21, %v65_v20  ;;  %v2082_v25 = vpack.c.bf16 %v68_v24, %v67_v23  ;;  %v2110_v26 = vld [vmem:[#allocation3] sm:$0xff]  ;;  %v2112_v27 = vld [vmem:[#allocation3 + $0x8] sm:$0xff]  ;;  %v2114_v28 = vld [vmem:[#allocation3 + $0x10] sm:$0xff]  ;;  %vm1108_vm14 = vcmask 1046528   ;;  %s1956_s7 = scalar_lea.vmem %s1156_s6, 1024 }
  0x2d   :  { %v2116_v29 = vld [vmem:[#allocation3 + $0x18] sm:$0xff]  ;;  %v2118_v31 = vld [vmem:[#allocation3 + $0x20] sm:$0xff]  ;;  %v2120_v37 = vld [vmem:[#allocation3 + $0x28] sm:$0xff]  ;;  %p1957_p2 = scmp.ne.s32.totalorder %s1156_s6, %s1956_s7  ;;  %p1962_p4 = scmp.lt.s32.totalorder %s1956_s7, %s1956_s7 }
  0x2e   :  { %1589 = vmatpush3.bf16.msra.mxu0 %v2046_v7  ;;  %1613 = vmatpush3.bf16.msra.mxu1 %v2046_v7  ;;  %v2126_v44 = vld [vmem:[#allocation3 + $0x30] sm:$0xff]  ;;  %v2129_v47 = vld [vmem:[#allocation3 + $0x38] sm:$0xff] }
  0x2f   :  { %1590 = vmatprep.subr.bf16.mxu0 %v1988_v0  ;;  %1614 = vmatprep.subr.bf16.mxu1 %v1988_v0  ;;  %p1963_p5 = por %p1962_p4, %p1961_p3 }
  0x31   :  { %p1964_p6 = pnand %p1963_p5, %p1957_p2 }
  0x32   :  { %1592 = vmatpush3.bf16.msra.mxu0 %v2052_v10  ;;  %1616 = vmatpush3.bf16.msra.mxu1 %v2052_v10 }
  0x33   :  { %1593 = vmatprep.subr.bf16.mxu0 %v1988_v0  ;;  %1617 = vmatprep.subr.bf16.mxu1 %v1988_v0 }
  0x36   :  { %1595 = vmatpush3.bf16.msra.mxu0 %v2058_v13  ;;  %1619 = vmatpush3.bf16.msra.mxu1 %v2058_v13 }
  0x37   :  { %1596 = vmatprep.subr.bf16.mxu0 %v1988_v0  ;;  %1620 = vmatprep.subr.bf16.mxu1 %v1988_v0 }
  0x3a   :  { %1598 = vmatpush3.bf16.msra.mxu0 %v2064_v16  ;;  %1622 = vmatpush3.bf16.msra.mxu1 %v2064_v16 }
  0x3b   :  { %1599 = vmatprep.subr.bf16.mxu0 %v1988_v0  ;;  %1623 = vmatprep.subr.bf16.mxu1 %v1988_v0 }
  0x3e   :  { %1601 = vmatpush3.bf16.msra.mxu0 %v2070_v19  ;;  %1625 = vmatpush3.bf16.msra.mxu1 %v2070_v19 }
  0x3f   :  { %1602 = vmatprep.subr.bf16.mxu0 %v1988_v0  ;;  %1626 = vmatprep.subr.bf16.mxu1 %v1988_v0 }
  0x42   :  { %1604 = vmatpush3.bf16.msra.mxu0 %v2076_v22  ;;  %1628 = vmatpush3.bf16.msra.mxu1 %v2076_v22 }
  0x43   :  { %1605 = vmatprep.subr.bf16.mxu0 %v1988_v0  ;;  %1629 = vmatprep.subr.bf16.mxu1 %v1988_v0 }
  0x46   :  { %1607 = vmatpush3.bf16.msra.mxu0 %v2082_v25  ;;  %1631 = vmatpush3.bf16.msra.mxu1 %v2082_v25 }
  0x47   :  { %1632 = vmatprep.subr.bf16.mxu0 %v1988_v0  ;;  %1656 = vmatprep.subr.bf16.mxu1 %v1988_v0 }
  0x49   :  { %1337 = vmatmul.mubr.f32.vlgmr.msra.gmra.mrb[0].mxu0 %v1990_v1 }
  0x4a   :  { %1634 = vmatpush3.bf16.msra.mxu0 %v2043_v5  ;;  %1406 = vmatprep.mubr.msk.f32.mxu0 %vm1989_vm0, %v1990_v1 }
  0x4b   :  { %1635 = vmatprep.subr.bf16.mxu0 %v1988_v0 }
  0x4e   :  { %1637 = vmatpush3.bf16.msra.mxu0 %v2046_v7 }
  0x4f   :  { %1638 = vmatprep.subr.bf16.mxu0 %v1988_v0 }
  0x52   :  { %1640 = vmatpush3.bf16.msra.mxu0 %v2052_v10 }
  0x53   :  { %1641 = vmatprep.subr.bf16.mxu0 %v1988_v0 }
  0x56   :  { %1643 = vmatpush3.bf16.msra.mxu0 %v2058_v13 }
  0x57   :  { %1644 = vmatprep.subr.bf16.mxu0 %v1988_v0 }
  0x5a   :  { %1646 = vmatpush3.bf16.msra.mxu0 %v2064_v16 }
  0x5b   :  { %1647 = vmatprep.subr.bf16.mxu0 %v1988_v0 }
  0x5e   :  { %1649 = vmatpush3.bf16.msra.mxu0 %v2070_v19 }
  0x5f   :  { %1650 = vmatprep.subr.bf16.mxu0 %v1988_v0 }
  0x62   :  { %1652 = vmatpush3.bf16.msra.mxu0 %v2076_v22 }
  0x63   :  { %1653 = vmatprep.subr.bf16.mxu0 %v1988_v0 }
  0x66   :  { %1655 = vmatpush3.bf16.msra.mxu0 %v2082_v25 }
  0x67   :  { %1680 = vmatprep.subr.bf16.mxu0 %v1988_v0 }
 0x11c   :  { %v136_v30 = vpop.f32.mrb[0].mxu0 }
 0x11d   :  { %v141_v32 = vrot.slane %v136_v30, 1  ;;  %v142_v33 = vrot.slane %v136_v30, 2  ;;  %v143_v34 = vrot.slane %v136_v30, 3  ;;  %v144_v35 = vrot.slane %v136_v30, 4  ;;  %v1338_v36 = vpop.f32.mrb[1].mxu0 }
 0x11e   :  { %v145_v38 = vrot.slane %v136_v30, 5  ;;  %v146_v39 = vrot.slane %v136_v30, 6  ;;  %v156_v40 = vadd.f32 %v136_v30, %v2110_v26  ;;  %v147_v45 = vrot.slane %v136_v30, 7 }
 0x11f   :  { %v157_v41 = vadd.f32 %v141_v32, %v2112_v27  ;;  %v158_v42 = vadd.f32 %v142_v33, %v2114_v28  ;;  %v159_v43 = vadd.f32 %v143_v34, %v2116_v29  ;;  %v160_v46 = vadd.f32 %v144_v35, %v2118_v31 }
 0x120   :  { %1784 = vtanh.f32 %v156_v40  ;;  %v161_v48 = vadd.f32 %v145_v38, %v2120_v37  ;;  %v162_v49 = vadd.f32 %v146_v39, %v2126_v44  ;;  %v163_v50 = vadd.f32 %v147_v45, %v2129_v47 }
 0x121   :  { %1786 = vtanh.f32 %v157_v41 }
 0x122   :  { %1788 = vtanh.f32 %v158_v42 }
 0x123   :  { %1790 = vtanh.f32 %v159_v43 }
 0x124   :  { %1792 = vtanh.f32 %v160_v46 }
 0x125   :  { %1794 = vtanh.f32 %v161_v48 }
 0x126   :  { %1796 = vtanh.f32 %v162_v49 }
 0x127   :  { %1798 = vtanh.f32 %v163_v50 }
 0x12a   :  { %v2134_v51 = vpop.eup %1784 }
 0x12b   :  { %v2136_v52 = vpop.eup %1786 }
 0x12c   :  { %v2138_v53 = vpop.eup %1788  ;;  %v180_v54 = vrot.slane %v2136_v52, 7 }
 0x12d   :  { %v2141_v55 = vpop.eup %1790  ;;  %v183_v56 = vrot.slane %v2138_v53, 6 }
 0x12e   :  { %v2144_v57 = vpop.eup %1792  ;;  %v182_v58 = vsel %vm181_vm1, %v180_v54, %v2134_v51  ;;  %v186_v59 = vrot.slane %v2141_v55, 5 }
 0x12f   :  { %v2149_v60 = vpop.eup %1794  ;;  %v185_v61 = vsel %vm184_vm2, %v183_v56, %v182_v58  ;;  %v189_v62 = vrot.slane %v2144_v57, 4 }
 0x130   :  { %v2153_v63 = vpop.eup %1796  ;;  %v188_v2 = vsel %vm187_vm3, %v186_v59, %v185_v61  ;;  %v192_v3 = vrot.slane %v2149_v60, 3 }
 0x131   :  { %v2157_v4 = vpop.eup %1798  ;;  %v191_v6 = vsel %vm190_vm4, %v189_v62, %v188_v2  ;;  %v195_v8 = vrot.slane %v2153_v63, 2 }
 0x132   :  { %v194_v9 = vsel %vm193_vm5, %v192_v3, %v191_v6  ;;  %v198_v11 = vrot.slane %v2157_v4, 1 }
 0x133   :  { %v197_v12 = vsel %vm196_vm6, %v195_v8, %v194_v9 }
 0x134   :  { %v200_v14 = vsel %vm199_vm7, %v198_v11, %v197_v12 }
 0x135   :  { %1372 = vmatmul.mubr.f32.vlgmr.msra.gmra.mrb[0].mxu1 %v200_v14 }
 0x136   :  { %1658 = vmatpush3.bf16.msra.mxu1 %v2043_v5  ;;  %1441 = vmatprep.mubr.msk.f32.mxu1 %vm1989_vm0, %v1990_v1 }
 0x137   :  { %1659 = vmatprep.subr.bf16.mxu1 %v1988_v0 }
 0x13a   :  { %1661 = vmatpush3.bf16.msra.mxu1 %v2046_v7 }
 0x13b   :  { %1662 = vmatprep.subr.bf16.mxu1 %v1988_v0 }
 0x13e   :  { %1664 = vmatpush3.bf16.msra.mxu1 %v2052_v10 }
 0x13f   :  { %1665 = vmatprep.subr.bf16.mxu1 %v1988_v0 }
 0x142   :  { %1667 = vmatpush3.bf16.msra.mxu1 %v2058_v13 }
 0x143   :  { %1668 = vmatprep.subr.bf16.mxu1 %v1988_v0 }
 0x146   :  { %1670 = vmatpush3.bf16.msra.mxu1 %v2064_v16 }
 0x147   :  { %1671 = vmatprep.subr.bf16.mxu1 %v1988_v0 }
 0x14a   :  { %1673 = vmatpush3.bf16.msra.mxu1 %v2070_v19 }
 0x14b   :  { %1674 = vmatprep.subr.bf16.mxu1 %v1988_v0 }
 0x14e   :  { %1676 = vmatpush3.bf16.msra.mxu1 %v2076_v22 }
 0x14f   :  { %1677 = vmatprep.subr.bf16.mxu1 %v1988_v0 }
 0x152   :  { %1679 = vmatpush3.bf16.msra.mxu1 %v2082_v25 }
 0x153   :  { %1704 = vmatprep.subr.bf16.mxu1 %v1988_v0 }
 0x208   :  { %v268_v15 = vpop.f32.mrb[0].mxu1 }
 0x209   :  { %v273_v17 = vrot.slane %v268_v15, 7  ;;  %v274_v18 = vrot.slane %v268_v15, 1  ;;  %v275_v20 = vrot.slane %v268_v15, 2  ;;  %v276_v21 = vrot.slane %v268_v15, 3  ;;  %v1373_v23 = vpop.f32.mrb[1].mxu1 }
 0x20a   :  { %v277_v24 = vrot.slane %v268_v15, 4  ;;  %v278_v30 = vrot.slane %v268_v15, 5  ;;  %v289_v32 = vadd.f32 %v268_v15, %v2112_v27  ;;  %v279_v33 = vrot.slane %v268_v15, 6 }
 0x20b   :  { %v288_v34 = vadd.f32 %v273_v17, %v2110_v26  ;;  %v290_v35 = vadd.f32 %v274_v18, %v2114_v28  ;;  %v291_v36 = vadd.f32 %v275_v20, %v2116_v29  ;;  %v292_v38 = vadd.f32 %v276_v21, %v2118_v31 }
 0x20c   :  { %1800 = vtanh.f32 %v289_v32  ;;  %v293_v39 = vadd.f32 %v277_v24, %v2120_v37  ;;  %v294_v40 = vadd.f32 %v278_v30, %v2126_v44  ;;  %v295_v41 = vadd.f32 %v279_v33, %v2129_v47 }
 0x20d   :  { %1802 = vtanh.f32 %v288_v34 }
 0x20e   :  { %1804 = vtanh.f32 %v290_v35 }
 0x20f   :  { %1806 = vtanh.f32 %v291_v36 }
 0x210   :  { %1808 = vtanh.f32 %v292_v38 }
 0x211   :  { %1810 = vtanh.f32 %v293_v39 }
 0x212   :  { %1812 = vtanh.f32 %v294_v40 }
 0x213   :  { %1814 = vtanh.f32 %v295_v41 }
 0x216   :  { %v2191_v42 = vpop.eup %1800 }
 0x217   :  { %v2193_v43 = vpop.eup %1802 }
 0x218   :  { %v2195_v45 = vpop.eup %1804  ;;  %v312_v46 = vrot.slane %v2193_v43, 1 }
 0x219   :  { %v2198_v48 = vpop.eup %1806  ;;  %v314_v49 = vrot.slane %v2195_v45, 7 }
 0x21a   :  { %v2201_v50 = vpop.eup %1808  ;;  %v313_v54 = vsel %vm181_vm1, %v2191_v42, %v312_v46  ;;  %v316_v56 = vrot.slane %v2198_v48, 6 }
 0x21b   :  { %v2206_v58 = vpop.eup %1810  ;;  %v315_v59 = vsel %vm184_vm2, %v314_v49, %v313_v54  ;;  %v318_v61 = vrot.slane %v2201_v50, 5  ;;  %v1057_v54 = vsel %vm1054_vm9, %v2138_v53, %v2195_v45  ;;  %v1058_v53 = vsel %vm1054_vm9, %v2141_v55, %v2198_v48 }
 0x21c   :  { %v2210_v62 = vpop.eup %1812  ;;  %v317_v2 = vsel %vm187_vm3, %v316_v56, %v315_v59  ;;  %v320_v3 = vrot.slane %v2206_v58, 4  ;;  %v1055_v59 = vsel %vm1054_vm9, %v2134_v51, %v2193_v43  ;;  %v1059_v45 = vsel %vm1054_vm9, %v2144_v57, %v2201_v50 }
 0x21d   :  { %v2214_v6 = vpop.eup %1814  ;;  %v319_v8 = vsel %vm190_vm4, %v318_v61, %v317_v2  ;;  %v322_v9 = vrot.slane %v2210_v62, 3  ;;  %v1061_v57 = vsel %vm1054_vm9, %v2153_v63, %v2210_v62 }
 0x21e   :  { %v321_v11 = vsel %vm193_vm5, %v320_v3, %v319_v8  ;;  %v324_v12 = vrot.slane %v2214_v6, 2  ;;  %v1056_v8 = vsel %vm1054_vm9, %v2136_v52, %v2191_v42 }
 0x21f   :  { %v323_v14 = vsel %vm196_vm6, %v322_v9, %v321_v11 }
 0x220   :  { %v325_v15 = vsel %vm199_vm7, %v324_v12, %v323_v14 }
 0x221   :  { %1407 = vmatmul.mubr.f32.vlgmr.msra.gmra.mrb[2].mxu0 %v325_v15 }
 0x222   :  { %1682 = vmatpush3.bf16.msra.mxu0 %v2043_v5  ;;  %1476 = vmatprep.mubr.msk.f32.mxu0 %vm1989_vm0, %v1990_v1 }
 0x223   :  { %1683 = vmatprep.subr.bf16.mxu0 %v1988_v0 }
 0x226   :  { %1685 = vmatpush3.bf16.msra.mxu0 %v2046_v7 }
 0x227   :  { %1686 = vmatprep.subr.bf16.mxu0 %v1988_v0 }
 0x22a   :  { %1688 = vmatpush3.bf16.msra.mxu0 %v2052_v10 }
 0x22b   :  { %1689 = vmatprep.subr.bf16.mxu0 %v1988_v0 }
 0x22e   :  { %1691 = vmatpush3.bf16.msra.mxu0 %v2058_v13 }
 0x22f   :  { %1692 = vmatprep.subr.bf16.mxu0 %v1988_v0 }
 0x232   :  { %1694 = vmatpush3.bf16.msra.mxu0 %v2064_v16 }
 0x233   :  { %1695 = vmatprep.subr.bf16.mxu0 %v1988_v0 }
 0x236   :  { %1697 = vmatpush3.bf16.msra.mxu0 %v2070_v19 }
 0x237   :  { %1698 = vmatprep.subr.bf16.mxu0 %v1988_v0 }
 0x23a   :  { %1700 = vmatpush3.bf16.msra.mxu0 %v2076_v22 }
 0x23b   :  { %1701 = vmatprep.subr.bf16.mxu0 %v1988_v0 }
 0x23e   :  { %1703 = vmatpush3.bf16.msra.mxu0 %v2082_v25 }
 0x23f   :  { %1728 = vmatprep.subr.bf16.mxu0 %v1988_v0 }
 0x2f4   :  { %v393_v17 = vpop.f32.mrb[2].mxu0 }
 0x2f5   :  { %v398_v18 = vrot.slane %v393_v17, 6  ;;  %v399_v20 = vrot.slane %v393_v17, 7  ;;  %v400_v21 = vrot.slane %v393_v17, 1  ;;  %v401_v23 = vrot.slane %v393_v17, 2  ;;  %v1408_v24 = vpop.f32.mrb[3].mxu0 }
 0x2f6   :  { %v402_v30 = vrot.slane %v393_v17, 3  ;;  %v403_v32 = vrot.slane %v393_v17, 4  ;;  %v415_v33 = vadd.f32 %v393_v17, %v2114_v28  ;;  %v404_v34 = vrot.slane %v393_v17, 5 }
 0x2f7   :  { %v413_v35 = vadd.f32 %v398_v18, %v2110_v26  ;;  %v414_v36 = vadd.f32 %v399_v20, %v2112_v27  ;;  %v416_v38 = vadd.f32 %v400_v21, %v2116_v29  ;;  %v417_v39 = vadd.f32 %v401_v23, %v2118_v31 }
 0x2f8   :  { %1816 = vtanh.f32 %v415_v33  ;;  %v418_v40 = vadd.f32 %v402_v30, %v2120_v37  ;;  %v419_v41 = vadd.f32 %v403_v32, %v2126_v44  ;;  %v420_v46 = vadd.f32 %v404_v34, %v2129_v47 }
 0x2f9   :  { %1818 = vtanh.f32 %v413_v35  ;;  %v1060_v17 = vsel %vm1054_vm9, %v2149_v60, %v2206_v58  ;;  %v1062_v60 = vsel %vm1054_vm9, %v2157_v4, %v2214_v6 }
 0x2fa   :  { %1820 = vtanh.f32 %v414_v36 }
 0x2fb   :  { %1822 = vtanh.f32 %v416_v38 }
 0x2fc   :  { %1824 = vtanh.f32 %v417_v39 }
 0x2fd   :  { %1826 = vtanh.f32 %v418_v40 }
 0x2fe   :  { %1828 = vtanh.f32 %v419_v41 }
 0x2ff   :  { %1830 = vtanh.f32 %v420_v46 }
 0x302   :  { %v1817_v49 = vpop.eup %1816 }
 0x303   :  { %v1819_v56 = vpop.eup %1818  ;;  %v2255_v61 = vsel %vm1063_vm8, %v1057_v54, %v1817_v49 }
 0x304   :  { %v1821_v2 = vpop.eup %1820  ;;  %v437_v3 = vrot.slane %v1819_v56, 2  ;;  %v2261_v9 = vsel %vm1063_vm8, %v1055_v59, %v1819_v56 }
 0x305   :  { %v1823_v11 = vpop.eup %1822  ;;  %v438_v12 = vrot.slane %v1821_v2, 1  ;;  %v2267_v51 = vsel %vm1063_vm8, %v1056_v8, %v1821_v2 }
 0x306   :  { %v1825_v43 = vpop.eup %1824  ;;  %v2273_v14 = vsel %vm1063_vm8, %v1058_v53, %v1823_v11  ;;  %v441_v15 = vrot.slane %v1823_v11, 7 }
 0x307   :  { %v1827_v52 = vpop.eup %1826  ;;  %v439_v42 = vsel %vm181_vm1, %v438_v12, %v437_v3  ;;  %v2280_v55 = vsel %vm1063_vm8, %v1059_v45, %v1825_v43  ;;  %v443_v20 = vrot.slane %v1825_v43, 6 }
 0x308   :  { %v1829_v48 = vpop.eup %1828  ;;  %v440_v18 = vsel %vm184_vm2, %v1817_v49, %v439_v42  ;;  %v2287_v50 = vsel %vm1063_vm8, %v1060_v17, %v1827_v52  ;;  %v445_v24 = vrot.slane %v1827_v52, 5 }
 0x309   :  { %v1831_v21 = vpop.eup %1830  ;;  %v442_v23 = vsel %vm187_vm3, %v441_v15, %v440_v18  ;;  %v2294_v58 = vsel %vm1063_vm8, %v1061_v57, %v1829_v48  ;;  %v447_v32 = vrot.slane %v1829_v48, 4 }
 0x30a   :  { %v444_v30 = vsel %vm190_vm4, %v443_v20, %v442_v23  ;;  %v2298_v33 = vsel %vm1063_vm8, %v1062_v60, %v1831_v21  ;;  %v449_v62 = vrot.slane %v1831_v21, 3 }
 0x30b   :  { %v446_v63 = vsel %vm193_vm5, %v445_v24, %v444_v30 }
 0x30c   :  { %v448_v34 = vsel %vm196_vm6, %v447_v32, %v446_v63 }
 0x30d   :  { %v450_v35 = vsel %vm199_vm7, %v449_v62, %v448_v34 }
 0x30e   :  { %1442 = vmatmul.mubr.f32.vlgmr.msra.gmra.mrb[2].mxu1 %v450_v35 }
 0x30f   :  { %1706 = vmatpush3.bf16.msra.mxu1 %v2043_v5  ;;  %1511 = vmatprep.mubr.msk.f32.mxu1 %vm1989_vm0, %v1990_v1 }
 0x310   :  { %1707 = vmatprep.subr.bf16.mxu1 %v1988_v0 }
 0x313   :  { %1709 = vmatpush3.bf16.msra.mxu1 %v2046_v7 }
 0x314   :  { %1710 = vmatprep.subr.bf16.mxu1 %v1988_v0 }
 0x317   :  { %1712 = vmatpush3.bf16.msra.mxu1 %v2052_v10 }
 0x318   :  { %1713 = vmatprep.subr.bf16.mxu1 %v1988_v0 }
 0x31b   :  { %1715 = vmatpush3.bf16.msra.mxu1 %v2058_v13 }
 0x31c   :  { %1716 = vmatprep.subr.bf16.mxu1 %v1988_v0 }
 0x31f   :  { %1718 = vmatpush3.bf16.msra.mxu1 %v2064_v16 }
 0x320   :  { %1719 = vmatprep.subr.bf16.mxu1 %v1988_v0 }
 0x323   :  { %1721 = vmatpush3.bf16.msra.mxu1 %v2070_v19 }
 0x324   :  { %1722 = vmatprep.subr.bf16.mxu1 %v1988_v0 }
 0x327   :  { %1724 = vmatpush3.bf16.msra.mxu1 %v2076_v22 }
 0x328   :  { %1725 = vmatprep.subr.bf16.mxu1 %v1988_v0 }
 0x32b   :  { %1727 = vmatpush3.bf16.msra.mxu1 %v2082_v25 }
 0x32c   :  { %1752 = vmatprep.subr.bf16.mxu1 %v1988_v0 }
 0x3e1   :  { %v518_v4 = vpop.f32.mrb[2].mxu1 }
 0x3e2   :  { %v523_v6 = vrot.slane %v518_v4, 5  ;;  %v524_v36 = vrot.slane %v518_v4, 6  ;;  %v525_v38 = vrot.slane %v518_v4, 7  ;;  %v526_v39 = vrot.slane %v518_v4, 1  ;;  %v1443_v40 = vpop.f32.mrb[3].mxu1 }
 0x3e3   :  { %v527_v41 = vrot.slane %v518_v4, 2  ;;  %v528_v46 = vrot.slane %v518_v4, 3  ;;  %v541_v49 = vadd.f32 %v518_v4, %v2116_v29  ;;  %v529_v54 = vrot.slane %v518_v4, 4 }
 0x3e4   :  { %v538_v56 = vadd.f32 %v523_v6, %v2110_v26  ;;  %v539_v59 = vadd.f32 %v524_v36, %v2112_v27  ;;  %v540_v2 = vadd.f32 %v525_v38, %v2114_v28  ;;  %v542_v3 = vadd.f32 %v526_v39, %v2118_v31 }
 0x3e5   :  { %1832 = vtanh.f32 %v541_v49  ;;  %v543_v8 = vadd.f32 %v527_v41, %v2120_v37  ;;  %v544_v11 = vadd.f32 %v528_v46, %v2126_v44  ;;  %v545_v12 = vadd.f32 %v529_v54, %v2129_v47 }
 0x3e6   :  { %1834 = vtanh.f32 %v538_v56 }
 0x3e7   :  { %1836 = vtanh.f32 %v539_v59 }
 0x3e8   :  { %1838 = vtanh.f32 %v540_v2 }
 0x3e9   :  { %1840 = vtanh.f32 %v542_v3 }
 0x3ea   :  { %1842 = vtanh.f32 %v543_v8 }
 0x3eb   :  { %1844 = vtanh.f32 %v544_v11 }
 0x3ec   :  { %1846 = vtanh.f32 %v545_v12 }
 0x3ef   :  { %v1833_v53 = vpop.eup %1832 }
 0x3f0   :  { %v1835_v43 = vpop.eup %1834  ;;  %v2331_v45 = vsel %vm1072_vm10, %v2273_v14, %v1833_v53 }
 0x3f1   :  { %v1837_v52 = vpop.eup %1836  ;;  %v562_v42 = vrot.slane %v1835_v43, 3  ;;  %v2335_v15 = vsel %vm1072_vm10, %v2261_v9, %v1835_v43 }
 0x3f2   :  { %v1839_v17 = vpop.eup %1838  ;;  %v563_v48 = vrot.slane %v1837_v52, 2  ;;  %v2339_v18 = vsel %vm1072_vm10, %v2267_v51, %v1837_v52 }
 0x3f3   :  { %v1841_v20 = vpop.eup %1840  ;;  %v565_v57 = vrot.slane %v1839_v17, 1  ;;  %v2343_v21 = vsel %vm1072_vm10, %v2255_v61, %v1839_v17 }
 0x3f4   :  { %v1843_v14 = vpop.eup %1842  ;;  %v564_v23 = vsel %vm181_vm1, %v563_v48, %v562_v42  ;;  %v1077_v24 = vsel %vm1072_vm10, %v2280_v55, %v1841_v20  ;;  %v568_v30 = vrot.slane %v1841_v20, 7 }
 0x3f5   :  { %v1845_v9 = vpop.eup %1844  ;;  %v566_v60 = vsel %vm184_vm2, %v565_v57, %v564_v23  ;;  %v2351_v51 = vsel %vm1072_vm10, %v2287_v50, %v1843_v14  ;;  %v570_v62 = vrot.slane %v1843_v14, 6 }
 0x3f6   :  { %v1847_v32 = vpop.eup %1846  ;;  %v567_v63 = vsel %vm187_vm3, %v1833_v53, %v566_v60  ;;  %v2356_v61 = vsel %vm1072_vm10, %v2294_v58, %v1845_v9  ;;  %v572_v35 = vrot.slane %v1845_v9, 5 }
 0x3f7   :  { %v569_v34 = vsel %vm190_vm4, %v568_v30, %v567_v63  ;;  %v2361_v55 = vsel %vm1072_vm10, %v2298_v33, %v1847_v32  ;;  %v574_v6 = vrot.slane %v1847_v32, 4 }
 0x3f8   :  { %v571_v4 = vsel %vm193_vm5, %v570_v62, %v569_v34 }
 0x3f9   :  { %v573_v50 = vsel %vm196_vm6, %v572_v35, %v571_v4 }
 0x3fa   :  { %v575_v36 = vsel %vm199_vm7, %v574_v6, %v573_v50 }
 0x3fb   :  { %1477 = vmatmul.mubr.f32.vlgmr.msra.gmra.mrb[4].mxu0 %v575_v36 }
 0x3fc   :  { %1730 = vmatpush3.bf16.msra.mxu0 %v2043_v5  ;;  %1546 = vmatprep.mubr.msk.f32.mxu0 %vm1989_vm0, %v1990_v1 }
 0x3fd   :  { %1731 = vmatprep.subr.bf16.mxu0 %v1988_v0 }
 0x400   :  { %1733 = vmatpush3.bf16.msra.mxu0 %v2046_v7 }
 0x401   :  { %1734 = vmatprep.subr.bf16.mxu0 %v1988_v0 }
 0x404   :  { %1736 = vmatpush3.bf16.msra.mxu0 %v2052_v10 }
 0x405   :  { %1737 = vmatprep.subr.bf16.mxu0 %v1988_v0 }
 0x408   :  { %1739 = vmatpush3.bf16.msra.mxu0 %v2058_v13 }
 0x409   :  { %1740 = vmatprep.subr.bf16.mxu0 %v1988_v0 }
 0x40c   :  { %1742 = vmatpush3.bf16.msra.mxu0 %v2064_v16 }
 0x40d   :  { %1743 = vmatprep.subr.bf16.mxu0 %v1988_v0 }
 0x410   :  { %1745 = vmatpush3.bf16.msra.mxu0 %v2070_v19 }
 0x411   :  { %1746 = vmatprep.subr.bf16.mxu0 %v1988_v0 }
 0x414   :  { %1748 = vmatpush3.bf16.msra.mxu0 %v2076_v22 }
 0x415   :  { %1749 = vmatprep.subr.bf16.mxu0 %v1988_v0 }
 0x418   :  { %1751 = vmatpush3.bf16.msra.mxu0 %v2082_v25 }
 0x4ce   :  { %v643_v58 = vpop.f32.mrb[4].mxu0 }
 0x4cf   :  { %v648_v33 = vrot.slane %v643_v58, 4  ;;  %v649_v38 = vrot.slane %v643_v58, 5  ;;  %v650_v39 = vrot.slane %v643_v58, 6  ;;  %v651_v40 = vrot.slane %v643_v58, 7  ;;  %v1478_v41 = vpop.f32.mrb[5].mxu0 }
 0x4d0   :  { %v652_v46 = vrot.slane %v643_v58, 1  ;;  %v653_v49 = vrot.slane %v643_v58, 2  ;;  %v667_v54 = vadd.f32 %v643_v58, %v2118_v31  ;;  %v654_v56 = vrot.slane %v643_v58, 3 }
 0x4d1   :  { %v663_v59 = vadd.f32 %v648_v33, %v2110_v26  ;;  %v664_v2 = vadd.f32 %v649_v38, %v2112_v27  ;;  %v665_v3 = vadd.f32 %v650_v39, %v2114_v28  ;;  %v666_v8 = vadd.f32 %v651_v40, %v2116_v29 }
 0x4d2   :  { %1848 = vtanh.f32 %v667_v54  ;;  %v668_v11 = vadd.f32 %v652_v46, %v2120_v37  ;;  %v669_v12 = vadd.f32 %v653_v49, %v2126_v44  ;;  %v670_v53 = vadd.f32 %v654_v56, %v2129_v47 }
 0x4d3   :  { %1850 = vtanh.f32 %v663_v59 }
 0x4d4   :  { %1852 = vtanh.f32 %v664_v2 }
 0x4d5   :  { %1854 = vtanh.f32 %v665_v3 }
 0x4d6   :  { %1856 = vtanh.f32 %v666_v8 }
 0x4d7   :  { %1858 = vtanh.f32 %v668_v11 }
 0x4d8   :  { %1860 = vtanh.f32 %v669_v12 }
 0x4d9   :  { %1862 = vtanh.f32 %v670_v53 }
 0x4dc   :  { %v1849_v43 = vpop.eup %1848 }
 0x4dd   :  { %v1851_v52 = vpop.eup %1850  ;;  %v2392_v42 = vsel %vm1081_vm11, %v1077_v24, %v1849_v43 }
 0x4de   :  { %v1853_v17 = vpop.eup %1852  ;;  %v687_v48 = vrot.slane %v1851_v52, 4  ;;  %v2396_v20 = vsel %vm1081_vm11, %v2335_v15, %v1851_v52 }
 0x4df   :  { %v1855_v57 = vpop.eup %1854  ;;  %v688_v14 = vrot.slane %v1853_v17, 3  ;;  %v2400_v23 = vsel %vm1081_vm11, %v2339_v18, %v1853_v17 }
 0x4e0   :  { %v1857_v9 = vpop.eup %1856  ;;  %v690_v60 = vrot.slane %v1855_v57, 2  ;;  %v2404_v30 = vsel %vm1081_vm11, %v2343_v21, %v1855_v57 }
 0x4e1   :  { %v1859_v24 = vpop.eup %1858  ;;  %v689_v32 = vsel %vm181_vm1, %v688_v14, %v687_v48  ;;  %v692_v63 = vrot.slane %v1857_v9, 1  ;;  %v2409_v15 = vsel %vm1081_vm11, %v2331_v45, %v1857_v9 }
 0x4e2   :  { %v1861_v62 = vpop.eup %1860  ;;  %v691_v34 = vsel %vm184_vm2, %v690_v60, %v689_v32  ;;  %v1087_v18 = vsel %vm1081_vm11, %v2351_v51, %v1859_v24  ;;  %v695_v6 = vrot.slane %v1859_v24, 7 }
 0x4e3   :  { %v1863_v35 = vpop.eup %1862  ;;  %v693_v4 = vsel %vm187_vm3, %v692_v63, %v691_v34  ;;  %v2417_v21 = vsel %vm1081_vm11, %v2356_v61, %v1861_v62  ;;  %v697_v36 = vrot.slane %v1861_v62, 6 }
 0x4e4   :  { %v694_v50 = vsel %vm190_vm4, %v1849_v43, %v693_v4  ;;  %v2422_v45 = vsel %vm1081_vm11, %v2361_v55, %v1863_v35  ;;  %v699_v33 = vrot.slane %v1863_v35, 5 }
 0x4e5   :  { %v696_v58 = vsel %vm193_vm5, %v695_v6, %v694_v50 }
 0x4e6   :  { %v698_v51 = vsel %vm196_vm6, %v697_v36, %v696_v58 }
 0x4e7   :  { %v700_v38 = vsel %vm199_vm7, %v699_v33, %v698_v51 }
 0x4e8   :  { %1512 = vmatmul.mubr.f32.vlgmr.msra.gmra.mrb[4].mxu1 %v700_v38 }
 0x4e9   :  { %1754 = vmatpush3.bf16.msra.mxu1 %v2043_v5  ;;  %1581 = vmatprep.mubr.msk.f32.mxu1 %vm1989_vm0, %v1990_v1 }
 0x4ea   :  { %1755 = vmatprep.subr.bf16.mxu1 %v1988_v0 }
 0x4ed   :  { %1757 = vmatpush3.bf16.msra.mxu1 %v2046_v7 }
 0x4ee   :  { %1758 = vmatprep.subr.bf16.mxu1 %v1988_v0 }
 0x4f1   :  { %1760 = vmatpush3.bf16.msra.mxu1 %v2052_v10 }
 0x4f2   :  { %1761 = vmatprep.subr.bf16.mxu1 %v1988_v0 }
 0x4f5   :  { %1763 = vmatpush3.bf16.msra.mxu1 %v2058_v13 }
 0x4f6   :  { %1764 = vmatprep.subr.bf16.mxu1 %v1988_v0 }
 0x4f9   :  { %1766 = vmatpush3.bf16.msra.mxu1 %v2064_v16 }
 0x4fa   :  { %1767 = vmatprep.subr.bf16.mxu1 %v1988_v0 }
 0x4fd   :  { %1769 = vmatpush3.bf16.msra.mxu1 %v2070_v19 }
 0x4fe   :  { %1770 = vmatprep.subr.bf16.mxu1 %v1988_v0 }
 0x501   :  { %1772 = vmatpush3.bf16.msra.mxu1 %v2076_v22 }
 0x502   :  { %1773 = vmatprep.subr.bf16.mxu1 %v1988_v0 }
 0x505   :  { %1775 = vmatpush3.bf16.msra.mxu1 %v2082_v25 }
 0x5bb   :  { %v768_v1 = vpop.f32.mrb[4].mxu1 }
 0x5bc   :  { %v773_v5 = vrot.slane %v768_v1, 3  ;;  %v774_v7 = vrot.slane %v768_v1, 4  ;;  %v775_v10 = vrot.slane %v768_v1, 5  ;;  %v776_v13 = vrot.slane %v768_v1, 6  ;;  %v1513_v61 = vpop.f32.mrb[5].mxu1 }
 0x5bd   :  { %v777_v55 = vrot.slane %v768_v1, 7  ;;  %v778_v16 = vrot.slane %v768_v1, 1  ;;  %v793_v39 = vadd.f32 %v768_v1, %v2120_v37  ;;  %v779_v40 = vrot.slane %v768_v1, 2 }
 0x5be   :  { %v788_v19 = vadd.f32 %v773_v5, %v2110_v26  ;;  %v789_v41 = vadd.f32 %v774_v7, %v2112_v27  ;;  %v790_v22 = vadd.f32 %v775_v10, %v2114_v28  ;;  %v791_v0 = vadd.f32 %v776_v13, %v2116_v29 }
 0x5bf   :  { %1864 = vtanh.f32 %v793_v39  ;;  %v792_v25 = vadd.f32 %v777_v55, %v2118_v31  ;;  %v794_v46 = vadd.f32 %v778_v16, %v2126_v44  ;;  %v795_v49 = vadd.f32 %v779_v40, %v2129_v47 }
 0x5c0   :  { %1866 = vtanh.f32 %v788_v19 }
 0x5c1   :  { %1868 = vtanh.f32 %v789_v41 }
 0x5c2   :  { %1870 = vtanh.f32 %v790_v22 }
 0x5c3   :  { %1872 = vtanh.f32 %v791_v0 }
 0x5c4   :  { %1874 = vtanh.f32 %v792_v25 }
 0x5c5   :  { %1876 = vtanh.f32 %v794_v46 }
 0x5c6   :  { %1878 = vtanh.f32 %v795_v49 }
 0x5c9   :  { %v1865_v54 = vpop.eup %1864 }
 0x5ca   :  { %v1867_v56 = vpop.eup %1866  ;;  %v2453_v59 = vsel %vm1090_vm12, %v1087_v18, %v1865_v54 }
 0x5cb   :  { %v1869_v2 = vpop.eup %1868  ;;  %v812_v3 = vrot.slane %v1867_v56, 5  ;;  %v1091_v8 = vsel %vm1090_vm12, %v2396_v20, %v1867_v56 }
 0x5cc   :  { %v1871_v11 = vpop.eup %1870  ;;  %v813_v12 = vrot.slane %v1869_v2, 4  ;;  %v1092_v53 = vsel %vm1090_vm12, %v2400_v23, %v1869_v2 }
 0x5cd   :  { %v1873_v43 = vpop.eup %1872  ;;  %v815_v52 = vrot.slane %v1871_v11, 3  ;;  %v1093_v17 = vsel %vm1090_vm12, %v2404_v30, %v1871_v11 }
 0x5ce   :  { %v1875_v48 = vpop.eup %1874  ;;  %v814_v57 = vsel %vm181_vm1, %v813_v12, %v812_v3  ;;  %v817_v14 = vrot.slane %v1873_v43, 2  ;;  %v1094_v9 = vsel %vm1090_vm12, %v2409_v15, %v1873_v43 }
 0x5cf   :  { %v1877_v60 = vpop.eup %1876  ;;  %v816_v20 = vsel %vm184_vm2, %v815_v52, %v814_v57  ;;  %v819_v24 = vrot.slane %v1875_v48, 1  ;;  %v1095_v32 = vsel %vm1090_vm12, %v2392_v42, %v1875_v48 }
 0x5d0   :  { %v1879_v23 = vpop.eup %1878  ;;  %v818_v63 = vsel %vm187_vm3, %v817_v14, %v816_v20  ;;  %v1097_v30 = vsel %vm1090_vm12, %v2417_v21, %v1877_v60  ;;  %v822_v34 = vrot.slane %v1877_v60, 7 }
 0x5d1   :  { %v820_v62 = vsel %vm190_vm4, %v819_v24, %v818_v63  ;;  %v1098_v18 = vsel %vm1090_vm12, %v2422_v45, %v1879_v23  ;;  %v824_v35 = vrot.slane %v1879_v23, 6 }
 0x5d2   :  { %v821_v15 = vsel %vm193_vm5, %v1865_v54, %v820_v62 }
 0x5d3   :  { %v823_v4 = vsel %vm196_vm6, %v822_v34, %v821_v15 }
 0x5d4   :  { %v825_v6 = vsel %vm199_vm7, %v824_v35, %v823_v4 }
 0x5d5   :  { %1547 = vmatmul.mubr.f32.vlgmr.msra.gmra.mrb[6].mxu0 %v825_v6 }
 0x6a8   :  { %v893_v42 = vpop.f32.mrb[6].mxu0 }
 0x6a9   :  { %v898_v50 = vrot.slane %v893_v42, 2  ;;  %v899_v36 = vrot.slane %v893_v42, 3  ;;  %v900_v58 = vrot.slane %v893_v42, 4  ;;  %v901_v33 = vrot.slane %v893_v42, 5  ;;  %v1548_v21 = vpop.f32.mrb[7].mxu0 }
 0x6aa   :  { %v902_v51 = vrot.slane %v893_v42, 6  ;;  %v903_v38 = vrot.slane %v893_v42, 7  ;;  %v919_v1 = vadd.f32 %v893_v42, %v2126_v44  ;;  %v904_v5 = vrot.slane %v893_v42, 1 }
 0x6ab   :  { %v913_v45 = vadd.f32 %v898_v50, %v2110_v26  ;;  %v914_v7 = vadd.f32 %v899_v36, %v2112_v27  ;;  %v915_v10 = vadd.f32 %v900_v58, %v2114_v28  ;;  %v916_v13 = vadd.f32 %v901_v33, %v2116_v29 }
 0x6ac   :  { %1880 = vtanh.f32 %v919_v1  ;;  %v917_v61 = vadd.f32 %v902_v51, %v2118_v31  ;;  %v918_v55 = vadd.f32 %v903_v38, %v2120_v37  ;;  %v920_v16 = vadd.f32 %v904_v5, %v2129_v47 }
 0x6ad   :  { %1882 = vtanh.f32 %v913_v45 }
 0x6ae   :  { %1884 = vtanh.f32 %v914_v7 }
 0x6af   :  { %1886 = vtanh.f32 %v915_v10 }
 0x6b0   :  { %1888 = vtanh.f32 %v916_v13 }
 0x6b1   :  { %1890 = vtanh.f32 %v917_v61 }
 0x6b2   :  { %1892 = vtanh.f32 %v918_v55 }
 0x6b3   :  { %1894 = vtanh.f32 %v920_v16 }
 0x6b6   :  { %v1881_v39 = vpop.eup %1880 }
 0x6b7   :  { %v1883_v40 = vpop.eup %1882  ;;  %v2485_v19 = vsel %vm1099_vm13, %v1097_v30, %v1881_v39 }
 0x6b8   :  { %v1885_v41 = vpop.eup %1884  ;;  %v937_v22 = vrot.slane %v1883_v40, 6  ;;  %v1100_v0 = vsel %vm1099_vm13, %v1091_v8, %v1883_v40 }
 0x6b9   :  { %v1887_v25 = vpop.eup %1886  ;;  %v938_v46 = vrot.slane %v1885_v41, 5  ;;  %v1101_v49 = vsel %vm1099_vm13, %v1092_v53, %v1885_v41 }
 0x6ba   :  { %v1889_v54 = vpop.eup %1888  ;;  %v940_v56 = vrot.slane %v1887_v25, 4  ;;  %v1102_v2 = vsel %vm1099_vm13, %v1093_v17, %v1887_v25 }
 0x6bb   :  { %v1891_v3 = vpop.eup %1890  ;;  %v939_v11 = vsel %vm181_vm1, %v938_v46, %v937_v22  ;;  %v942_v12 = vrot.slane %v1889_v54, 3  ;;  %v1103_v43 = vsel %vm1099_vm13, %v1094_v9, %v1889_v54 }
 0x6bc   :  { %v1893_v52 = vpop.eup %1892  ;;  %v941_v48 = vsel %vm184_vm2, %v940_v56, %v939_v11  ;;  %v944_v57 = vrot.slane %v1891_v3, 2  ;;  %v1104_v8 = vsel %vm1099_vm13, %v1095_v32, %v1891_v3 }
 0x6bd   :  { %v1895_v14 = vpop.eup %1894  ;;  %v943_v60 = vsel %vm187_vm3, %v942_v12, %v941_v48  ;;  %v946_v53 = vrot.slane %v1893_v52, 1  ;;  %v1105_v20 = vsel %vm1099_vm13, %v2453_v59, %v1893_v52 }
 0x6be   :  { %v945_v17 = vsel %vm190_vm4, %v944_v57, %v943_v60  ;;  %v1107_v24 = vsel %vm1099_vm13, %v1098_v18, %v1895_v14  ;;  %v949_v9 = vrot.slane %v1895_v14, 7 }
 0x6bf   :  { %v947_v23 = vsel %vm193_vm5, %v946_v53, %v945_v17 }
 0x6c0   :  { %v948_v63 = vsel %vm196_vm6, %v1881_v39, %v947_v23 }
 0x6c1   :  { %v950_v30 = vsel %vm199_vm7, %v949_v9, %v948_v63 }
 0x6c2   :  { %1582 = vmatmul.mubr.f32.vlgmr.msra.gmra.mrb[6].mxu1 %v950_v30 }
 0x795   :  { %v1018_v32 = vpop.f32.mrb[6].mxu1 }
 0x796   :  { %v1023_v62 = vrot.slane %v1018_v32, 1  ;;  %v1024_v34 = vrot.slane %v1018_v32, 2  ;;  %v1025_v15 = vrot.slane %v1018_v32, 3  ;;  %v1026_v35 = vrot.slane %v1018_v32, 4  ;;  %v1583_v4 = vpop.f32.mrb[7].mxu1 }
 0x797   :  { %v1027_v6 = vrot.slane %v1018_v32, 5  ;;  %v1028_v59 = vrot.slane %v1018_v32, 6  ;;  %v1045_v42 = vadd.f32 %v1018_v32, %v2129_v47  ;;  %v1029_v50 = vrot.slane %v1018_v32, 7 }
 0x798   :  { %v1038_v18 = vadd.f32 %v1023_v62, %v2110_v26  ;;  %v1039_v36 = vadd.f32 %v1024_v34, %v2112_v27  ;;  %v1040_v58 = vadd.f32 %v1025_v15, %v2114_v28  ;;  %v1041_v33 = vadd.f32 %v1026_v35, %v2116_v29 }
 0x799   :  { %1896 = vtanh.f32 %v1045_v42  ;;  %v1042_v21 = vadd.f32 %v1027_v6, %v2118_v31  ;;  %v1043_v51 = vadd.f32 %v1028_v59, %v2120_v37  ;;  %v1044_v38 = vadd.f32 %v1029_v50, %v2126_v44 }
 0x79a   :  { %1898 = vtanh.f32 %v1038_v18 }
 0x79b   :  { %1900 = vtanh.f32 %v1039_v36 }
 0x79c   :  { %1902 = vtanh.f32 %v1040_v58 }
 0x79d   :  { %1904 = vtanh.f32 %v1041_v33 }
 0x79e   :  { %1906 = vtanh.f32 %v1042_v21 }
 0x79f   :  { %1908 = vtanh.f32 %v1043_v51 }
 0x7a0   :  { %1910 = vtanh.f32 %v1044_v38 }
 0x7a3   :  { %v1897_v26 = vpop.eup %1896 }
 0x7a4   :  { %v1899_v27 = vpop.eup %1898  ;;  %v1116_v28 = vsel %vm1108_vm14, %v1107_v24, %v1897_v26 }
 0x7a5   :  { %v1901_v29 = vpop.eup %1900  ;;  %v1109_v47 = vsel %vm1108_vm14, %v1100_v0, %v1899_v27  ;;  %1124 = vst [vmem:[#allocation8 + $0x38] sm:$0xff] %v1116_v28 }
 0x7a6   :  { %v1903_v31 = vpop.eup %1902  ;;  %v1110_v37 = vsel %vm1108_vm14, %v1101_v49, %v1901_v29  ;;  %1117 = vst [vmem:[#allocation8] sm:$0xff] %v1109_v47 }
 0x7a7   :  { %v1905_v1 = vpop.eup %1904  ;;  %v1111_v44 = vsel %vm1108_vm14, %v1102_v2, %v1903_v31  ;;  %1118 = vst [vmem:[#allocation8 + $0x8] sm:$0xff] %v1110_v37 }
 0x7a8   :  { %v1907_v5 = vpop.eup %1906  ;;  %v1112_v45 = vsel %vm1108_vm14, %v1103_v43, %v1905_v1  ;;  %1119 = vst [vmem:[#allocation8 + $0x10] sm:$0xff] %v1111_v44 }
 0x7a9   :  { %v1909_v7 = vpop.eup %1908  ;;  %v1113_v10 = vsel %vm1108_vm14, %v1104_v8, %v1907_v5  ;;  %1120 = vst [vmem:[#allocation8 + $0x18] sm:$0xff] %v1112_v45 }
 0x7aa   :  { %v1911_v13 = vpop.eup %1910  ;;  %v1114_v61 = vsel %vm1108_vm14, %v1105_v20, %v1909_v7  ;;  %1121 = vst [vmem:[#allocation8 + $0x20] sm:$0xff] %v1113_v10 }
 0x7ab   :  { %v1115_v55 = vsel %vm1108_vm14, %v2485_v19, %v1911_v13  ;;  %1122 = vst [vmem:[#allocation8 + $0x28] sm:$0xff] %v1114_v61 }
 0x7ac   :  { %1123 = vst [vmem:[#allocation8 + $0x30] sm:$0xff] %v1115_v55 }
 0x7ad   :  { %1967 = shalt.err (!%p1964_p6)
}
 0x7ae   :  { %s1968_s10 = scalar_lea.hbm %s2536_s2, 1024 }
 0x7af   :  { %p1969_p7 = scmp.ne.s32.totalorder %s2536_s2, %s1968_s10  ;;  %p1972_p8 = scmp.lt.u32.totalorder %s1968_s10, %s2536_s2 }
 0x7b1   :  { %p1974_p9 = pnand %p1972_p8, %p1969_p7 }
 0x7b3   :  { %1977 = shalt.err (!%p1974_p9)
}
 0x7b4   :  { %1161 = dma.vmem_to_hbm [thread:$0]  %s1156_s6, 1024, %s2536_s2, [#allocation5], %s1985_s19, %s1985_s19, %s1986_s20  }
 0x7b5   :  { %1982 = dma.done.wait [#allocation5], 1024  }
 0x7b6   :  { %1983 = vsyncadd [#allocation5], 4294966272 }
 0x7b7   :  { %1165 = vsyncpa [#allocation4], 1 }
 0x7b8   :  { %1166 = vsyncpa [#allocation7], 1 }
 0x7b9   :  { %1167 = vsyncpa [#allocation5], 1 }

</bundles_post_ra>
